<compile_context>
chip_gen: v7x
topology: tpu7x:2x2x1
jax: 0.10.0
libtpu: 0.0.40
codegen_flags: <defaults>
</compile_context>

<pallas_src>
import functools
import math

import jax
import jax.numpy as jnp
from jax.experimental import pallas as pl
from jax.experimental.pallas import tpu as pltpu


# ----------------------------- helpers --------------------------------------

def _round_up(x, m):
    return ((x + m - 1) // m) * m


def _round_down(x, m):
    return (x // m) * m


def _orthogonal(key, shape, gain):
    """Deterministic orthogonal init (same semantics as torch.nn.init.orthogonal_)."""
    rows, cols = shape
    n = max(rows, cols)
    a = jax.random.normal(key, (n, n), dtype=jnp.float32)
    q, r = jnp.linalg.qr(a)
    q = q * jnp.sign(jnp.diag(r))[None, :]   # sign-stabilize
    return gain * q[:rows, :cols]


# ----------------------------- parameter init ------------------------------

def init_params(key, input_dim, dim, num_layers, action_std=1.0, bias_const=0.0):
    """Returns list of (W, b) with W: (in, out), b: (1, out) — logical (unpadded)."""
    sqrt2 = float(jnp.sqrt(2.0))
    sizes = [(input_dim, dim, sqrt2)]
    for _ in range(num_layers - 1):
        sizes.append((dim, dim, sqrt2))
    sizes.append((dim, 1, float(action_std)))

    params = []
    for i, (fan_in, fan_out, gain) in enumerate(sizes):
        k = jax.random.fold_in(key, i)
        # torch initializes weight of shape (out, in); build (out, in) then transpose
        w_t = _orthogonal(k, (fan_out, fan_in), gain)            # (out, in)
        w = jnp.asarray(w_t.T, dtype=jnp.float32)                 # (in, out)
        b = jnp.full((1, fan_out), bias_const, dtype=jnp.float32)
        params.append((w, b))
    return params


def pad_params(params, compute_dtype=jnp.bfloat16):
    """Zero-pad all widths to multiples of 128 lanes and flatten for the kernel.

    Returns [W0, b0, W1, b1, ...] where:
      * Wi: (128-padded in, 128-padded out), stored in `compute_dtype` (MXU operand)
      * bi: (1, 128-padded out), f32 (VPU operand)
    The final layer's out dim (1) is padded to 128 so the last projection is a
    lane-dense MXU matmul; padded columns/channels are exact zeros throughout
    (zero weights + zero biases, tanh(0)=0), so semantics are unchanged.
    """
    flat = []
    for (w, b) in params:
        fan_in, fan_out = w.shape
        in_pad = _round_up(fan_in, 128)
        out_pad = _round_up(fan_out, 128)
        wp = jnp.zeros((in_pad, out_pad), jnp.float32).at[:fan_in, :fan_out].set(w)
        bp = jnp.zeros((1, out_pad), jnp.float32).at[:, :fan_out].set(b[0])
        flat.append(wp.astype(compute_dtype))   # MXU operand (bf16 by default)
        flat.append(bp)                          # bias stays f32 (v5e-safe VPU)
    return flat


# ------------------------- capability / tiling logic ------------------------

@functools.lru_cache(maxsize=1)
def _supports_buffered_one():
    """Probe whether pipeline_mode=pl.Buffered(1) (single-buffered resident block)
    compiles on this jax/libtpu; fall back to default double-buffering if not."""
    try:
        def k(x_ref, o_ref):
            o_ref[...] = x_ref[...]
        f = pl.pallas_call(
            k,
            out_shape=jax.ShapeDtypeStruct((8, 128), jnp.float32),
            grid=(1,),
            in_specs=[pl.BlockSpec((8, 128), lambda i: (0, 0),
                                   pipeline_mode=pl.Buffered(1))],
            out_specs=pl.BlockSpec((8, 128), lambda i: (0, 0)),
        )
        jax.block_until_ready(f(jnp.zeros((8, 128), jnp.float32)))
        return True
    except Exception:
        return False


def _vmem_capacity_bytes():
    try:
        return int(pltpu.get_tpu_info().vmem_capacity_bytes)
    except Exception:
        return 64 << 20    # conservative fallback: v7x per-TensorCore VMEM


def _choose_tiling(B, f_pad, act_widths, params_bytes, single_buffer, max_tb):
    """Derive (tb, padded batch, vmem_limit) from the per-generation VMEM budget."""
    cap = _vmem_capacity_bytes()
    budget = (cap * 3) // 4                        # leave 25% of VMEM to the compiler
    max_w = max([f_pad] + list(act_widths))
    # Per-batch-row VMEM: double-buffered f32 x tile + double-buffered f32 out tile
    # + ~4 live f32 activation temporaries at the widest layer inside the body.
    per_row = 2 * f_pad * 4 + 2 * 128 * 4 + 4 * max_w * 4
    resident = params_bytes * (1 if single_buffer else 2)
    avail = budget - resident - (4 << 20)
    tb_cap = max(avail // per_row, 8)
    tb_cap = min(int(tb_cap), int(max_tb))
    tb_cap = max(_round_down(tb_cap, 8), 8)
    # TODO(synk): for very large flattened inputs (F in the tens of thousands) split the
    # first layer over a K grid axis with an accumulator instead of shrinking tb.

    if B <= tb_cap:
        tb = max(_round_up(B, 8), 8)
        n_steps = 1
    else:
        n_steps = -(-B // tb_cap)                  # minimize batch padding
        tb = _round_up(-(-B // n_steps), 8)
    b_pad = tb * n_steps

    needed = resident + tb * per_row + (4 << 20)
    vmem_limit = int(min(max(needed, 32 << 20), budget))
    return tb, b_pad, vmem_limit


# ------------------------------- Pallas kernel ------------------------------

def _param_spec(shape, single_buffer):
    if single_buffer:
        return pl.BlockSpec(shape, lambda i: (0, 0), pipeline_mode=pl.Buffered(1))
    return pl.BlockSpec(shape, lambda i: (0, 0))


def _make_mlp_kernel(n_layers):
    def kernel(*refs):
        # refs = (x, W0, b0, W1, b1, ..., o)
        x_ref = refs[0]
        o_ref = refs[-1]
        h = x_ref[...]                                    # (tb, F_pad) f32
        for i in range(n_layers):
            w = refs[1 + 2 * i][...]                      # (in_pad, out_pad) MXU dtype
            b = refs[2 + 2 * i][...]                      # (1, out_pad) f32
            acc = jnp.dot(h.astype(w.dtype), w,
                          preferred_element_type=jnp.float32) + b   # MXU, f32 acc
            h = jnp.tanh(acc) if i < n_layers - 1 else acc          # f32 VPU/EUP
        o_ref[...] = h.astype(o_ref.dtype)                # lane-dense (tb, 128) store
    return kernel


@functools.partial(jax.jit, static_argnames=("tb", "single_buffer", "vmem_limit"))
def _mlp_forward(x, flat_params, *, tb, single_buffer, vmem_limit):
    """x: (B_pad, F_pad) f32 with B_pad % tb == 0 and F_pad % 128 == 0."""
    b_pad, f_pad = x.shape
    n_layers = len(flat_params) // 2
    out_w = int(flat_params[-2].shape[1])                 # 128 (lane-dense out)

    grid = (b_pad // tb,)
    in_specs = [pl.BlockSpec((tb, f_pad), lambda i: (i, 0))]
    for p in flat_params:
        in_specs.append(_param_spec(p.shape, single_buffer))
    out_spec = pl.BlockSpec((tb, out_w), lambda i: (i, 0))

    # Advisory cost estimate for the XLA scheduler.
    flops = 0
    for i in range(n_layers):
        w = flat_params[2 * i]
        flops += 2 * b_pad * int(w.shape[0]) * int(w.shape[1])
    transcendentals = b_pad * sum(int(flat_params[2 * i].shape[1])
                                  for i in range(max(n_layers - 1, 0)))
    bytes_accessed = (int(x.size) * x.dtype.itemsize
                      + sum(int(p.size) * p.dtype.itemsize for p in flat_params)
                      + b_pad * out_w * 4)

    return pl.pallas_call(
        _make_mlp_kernel(n_layers),
        out_shape=jax.ShapeDtypeStruct((b_pad, out_w), jnp.float32),
        grid=grid,
        in_specs=in_specs,
        out_specs=out_spec,
        compiler_params=pltpu.CompilerParams(
            dimension_semantics=("parallel",),            # megacore / v7x 2-TC sharding
            vmem_limit_bytes=int(vmem_limit),
        ),
        cost_estimate=pl.CostEstimate(
            flops=int(flops),
            transcendentals=int(transcendentals),
            bytes_accessed=int(bytes_accessed),
        ),
    )(x, *flat_params)


# --------------------------------- wrapper ----------------------------------

class CnnPallas:
    """JAX/Pallas equivalent of the PyTorch `cnn` module."""

    def __init__(self, dim, input_dim, num_layers, dropout=0.0, action_std=1.0,
                 key=None, compute_dtype=jnp.bfloat16, max_block_batch=4096):
        # `dropout` accepted for signature parity; the PyTorch module never uses it either.
        if key is None:
            key = jax.random.PRNGKey(0)
        if isinstance(input_dim, (tuple, list)):
            self.in_features = int(math.prod(int(d) for d in input_dim))
        else:
            self.in_features = int(input_dim)

        self.params = init_params(key, self.in_features, dim, num_layers, action_std)
        self.flat_params = pad_params(self.params, compute_dtype=compute_dtype)
        self.f_pad = _round_up(self.in_features, 128)
        self.act_widths = [int(w.shape[1]) for w in self.flat_params[0::2]]
        self.params_bytes = sum(int(p.size) * p.dtype.itemsize
                                for p in self.flat_params)
        self.single_buffer = _supports_buffered_one()
        self.max_block_batch = int(max_block_batch)

    def __call__(self, x):
        lead = x.shape[:-1]
        f = int(x.shape[-1])
        assert f == self.in_features, (f, self.in_features)
        x2 = x.reshape(-1, f).astype(jnp.float32)
        B = x2.shape[0]

        tb, b_pad, vmem_limit = _choose_tiling(
            B, self.f_pad, self.act_widths, self.params_bytes,
            self.single_buffer, self.max_block_batch)

        pad_rows = b_pad - B
        pad_cols = self.f_pad - f
        if pad_rows or pad_cols:
            x2 = jnp.pad(x2, ((0, pad_rows), (0, pad_cols)))

        out = _mlp_forward(x2, self.flat_params, tb=tb,
                           single_buffer=self.single_buffer,
                           vmem_limit=vmem_limit)
        return out[:B, :1].reshape(*lead, 1)


def _reference(x, params):
    h = x
    for i, (w, b) in enumerate(params):
        h = h @ w + b
        if i < len(params) - 1:
            h = jnp.tanh(h)
    return h


if __name__ == "__main__":
    key = jax.random.PRNGKey(0)
    batch, input_dim, dim, num_layers = 64, 32, 32, 2

    x = jax.random.normal(jax.random.fold_in(key, 123), (batch, input_dim),
                          dtype=jnp.float32)

    # f32 MXU-operand path: tight tolerance vs pure-JAX reference.
    model_f32 = CnnPallas(dim=dim, input_dim=input_dim, num_layers=num_layers,
                          dropout=0.0, action_std=1.0, key=key,
                          compute_dtype=jnp.float32)
    out_f32 = jax.block_until_ready(model_f32(x))
    ref = _reference(x, model_f32.params)
    assert out_f32.shape == (batch, 1), out_f32.shape
    assert jnp.allclose(out_f32, ref, atol=1e-5, rtol=1e-5), "f32 mismatch vs reference"

    # Default bf16-operand path (full-rate MXU on v5e/v6e/v7x; f32 accumulate,
    # f32 bias add + tanh).
    model_bf16 = CnnPallas(dim=dim, input_dim=input_dim, num_layers=num_layers,
                           dropout=0.0, action_std=1.0, key=key)
    out_bf16 = jax.block_until_ready(model_bf16(x))
    assert out_bf16.shape == (batch, 1)
    assert jnp.allclose(out_bf16, ref, atol=1e-1, rtol=1e-1), "bf16 path diverged"

    print("KERNEL_OK")
</pallas_src>

<mosaic_0001>
module attributes {stable_mosaic.version = 11 : i64} {
  func.func @k(%arg0: i32, %arg1: memref<8x128xf32, #tpu.memory_space<vmem>>, %arg2: memref<8x128xf32, #tpu.memory_space<vmem>>) attributes {dimension_semantics = [#tpu.dimension_semantics<arbitrary>], iteration_bounds = array<i64: 1>, scalar_prefetch = 0 : i64, scratch_operands = 0 : i64, tpu.core_type = #tpu.core_type<tc>, window_params = [{pipeline_mode = #tpu.pipeline_mode<synchronous>, transform_indices = @transform_0, window_bounds = array<i64: 8, 128>}, {pipeline_mode = #tpu.pipeline_mode<synchronous>, transform_indices = @transform_1, window_bounds = array<i64: 8, 128>}]} {
    %c0 = arith.constant 0 : index
    %c0_0 = arith.constant 0 : index
    %0 = vector.load %arg1[%c0, %c0_0] : memref<8x128xf32, #tpu.memory_space<vmem>>, vector<8x128xf32>
    %c0_1 = arith.constant 0 : index
    %c0_2 = arith.constant 0 : index
    %1 = vector.load %arg2[%c0_1, %c0_2] : memref<8x128xf32, #tpu.memory_space<vmem>>, vector<8x128xf32>
    tpu.vector_store %arg2[%c0_1, %c0_2], %0 {strides = array<i32>} : memref<8x128xf32, #tpu.memory_space<vmem>>, vector<8x128xf32>,
    return
  }
  func.func @transform_0(%arg0: i32) -> (i32, i32) {
    %c0_i32 = arith.constant 0 : i32
    %c0_i32_0 = arith.constant 0 : i32
    %c0_i32_1 = arith.constant 0 : i32
    return %c0_i32, %c0_i32_0 : i32, i32
  }
  func.func @transform_1(%arg0: i32) -> (i32, i32) {
    %c0_i32 = arith.constant 0 : i32
    %c0_i32_0 = arith.constant 0 : i32
    %c0_i32_1 = arith.constant 0 : i32
    return %c0_i32, %c0_i32_0 : i32, i32
  }
}

module attributes {stable_mosaic.version = 11 : i64} {
  func.func @kernel(%arg0: i32, %arg1: memref<64x128xf32, #tpu.memory_space<vmem>>, %arg2: memref<128x128xf32, #tpu.memory_space<vmem>>, %arg3: memref<1x128xf32, #tpu.memory_space<vmem>>, %arg4: memref<128x128xf32, #tpu.memory_space<vmem>>, %arg5: memref<1x128xf32, #tpu.memory_space<vmem>>, %arg6: memref<128x128xf32, #tpu.memory_space<vmem>>, %arg7: memref<1x128xf32, #tpu.memory_space<vmem>>, %arg8: memref<64x128xf32, #tpu.memory_space<vmem>>) attributes {dimension_semantics = [#tpu.dimension_semantics<parallel>], iteration_bounds = array<i64: 1>, scalar_prefetch = 0 : i64, scratch_operands = 0 : i64, tpu.core_type = #tpu.core_type<tc>, window_params = [{transform_indices = @transform_0, window_bounds = array<i64: 64, 128>}, {pipeline_mode = #tpu.pipeline_mode<synchronous>, transform_indices = @transform_1, window_bounds = array<i64: 128, 128>}, {pipeline_mode = #tpu.pipeline_mode<synchronous>, transform_indices = @transform_2, window_bounds = array<i64: 1, 128>}, {pipeline_mode = #tpu.pipeline_mode<synchronous>, transform_indices = @transform_3, window_bounds = array<i64: 128, 128>}, {pipeline_mode = #tpu.pipeline_mode<synchronous>, transform_indices = @transform_4, window_bounds = array<i64: 1, 128>}, {pipeline_mode = #tpu.pipeline_mode<synchronous>, transform_indices = @transform_5, window_bounds = array<i64: 128, 128>}, {pipeline_mode = #tpu.pipeline_mode<synchronous>, transform_indices = @transform_6, window_bounds = array<i64: 1, 128>}, {transform_indices = @transform_7, window_bounds = array<i64: 64, 128>}]} {
    %c0 = arith.constant 0 : index
    %c0_0 = arith.constant 0 : index
    %0 = vector.load %arg1[%c0, %c0_0] : memref<64x128xf32, #tpu.memory_space<vmem>>, vector<64x128xf32>
    %c0_1 = arith.constant 0 : index
    %c0_2 = arith.constant 0 : index
    %1 = vector.load %arg2[%c0_1, %c0_2] : memref<128x128xf32, #tpu.memory_space<vmem>>, vector<128x128xf32>
    %c0_3 = arith.constant 0 : index
    %c0_4 = arith.constant 0 : index
    %2 = vector.load %arg3[%c0_3, %c0_4] : memref<1x128xf32, #tpu.memory_space<vmem>>, vector<1x128xf32>
    %cst = arith.constant dense<0.000000e+00> : vector<64x128xf32>
    %3 = tpu.matmul %0, %1, %cst {dimension_numbers = #tpu.dot_dimension_numbers<[1], [0], [0], [1], [0, 0, 1, 1], [], []>} : vector<64x128xf32>, vector<128x128xf32>, vector<64x128xf32> -> vector<64x128xf32>
    %4 = vector.broadcast %2 : vector<1x128xf32> to vector<64x128xf32>
    %5 = arith.addf %3, %4 : vector<64x128xf32>
    %6 = math.tanh %5 : vector<64x128xf32>
    %c0_5 = arith.constant 0 : index
    %c0_6 = arith.constant 0 : index
    %7 = vector.load %arg4[%c0_5, %c0_6] : memref<128x128xf32, #tpu.memory_space<vmem>>, vector<128x128xf32>
    %c0_7 = arith.constant 0 : index
    %c0_8 = arith.constant 0 : index
    %8 = vector.load %arg5[%c0_7, %c0_8] : memref<1x128xf32, #tpu.memory_space<vmem>>, vector<1x128xf32>
    %cst_9 = arith.constant dense<0.000000e+00> : vector<64x128xf32>
    %9 = tpu.matmul %6, %7, %cst_9 {dimension_numbers = #tpu.dot_dimension_numbers<[1], [0], [0], [1], [0, 0, 1, 1], [], []>} : vector<64x128xf32>, vector<128x128xf32>, vector<64x128xf32> -> vector<64x128xf32>
    %10 = vector.broadcast %8 : vector<1x128xf32> to vector<64x128xf32>
    %11 = arith.addf %9, %10 : vector<64x128xf32>
    %12 = math.tanh %11 : vector<64x128xf32>
    %c0_10 = arith.constant 0 : index
    %c0_11 = arith.constant 0 : index
    %13 = vector.load %arg6[%c0_10, %c0_11] : memref<128x128xf32, #tpu.memory_space<vmem>>, vector<128x128xf32>
    %c0_12 = arith.constant 0 : index
    %c0_13 = arith.constant 0 : index
    %14 = vector.load %arg7[%c0_12, %c0_13] : memref<1x128xf32, #tpu.memory_space<vmem>>, vector<1x128xf32>
    %cst_14 = arith.constant dense<0.000000e+00> : vector<64x128xf32>
    %15 = tpu.matmul %12, %13, %cst_14 {dimension_numbers = #tpu.dot_dimension_numbers<[1], [0], [0], [1], [0, 0, 1, 1], [], []>} : vector<64x128xf32>, vector<128x128xf32>, vector<64x128xf32> -> vector<64x128xf32>
    %16 = vector.broadcast %14 : vector<1x128xf32> to vector<64x128xf32>
    %17 = arith.addf %15, %16 : vector<64x128xf32>
    %c0_15 = arith.constant 0 : index
    %c0_16 = arith.constant 0 : index
    %18 = vector.load %arg8[%c0_15, %c0_16] : memref<64x128xf32, #tpu.memory_space<vmem>>, vector<64x128xf32>
    tpu.vector_store %arg8[%c0_15, %c0_16], %17 {strides = array<i32>} : memref<64x128xf32, #tpu.memory_space<vmem>>, vector<64x128xf32>,
    return
  }
  func.func @transform_0(%arg0: i32) -> (i32, i32) {
    %c0_i32 = arith.constant 0 : i32
    %c0_i32_0 = arith.constant 0 : i32
    return %arg0, %c0_i32 : i32, i32
  }
  func.func @transform_1(%arg0: i32) -> (i32, i32) {
    %c0_i32 = arith.constant 0 : i32
    %c0_i32_0 = arith.constant 0 : i32
    %c0_i32_1 = arith.constant 0 : i32
    return %c0_i32, %c0_i32_0 : i32, i32
  }
  func.func @transform_2(%arg0: i32) -> (i32, i32) {
    %c0_i32 = arith.constant 0 : i32
    %c0_i32_0 = arith.constant 0 : i32
    %c0_i32_1 = arith.constant 0 : i32
    return %c0_i32, %c0_i32_0 : i32, i32
  }
  func.func @transform_3(%arg0: i32) -> (i32, i32) {
    %c0_i32 = arith.constant 0 : i32
    %c0_i32_0 = arith.constant 0 : i32
    %c0_i32_1 = arith.constant 0 : i32
    return %c0_i32, %c0_i32_0 : i32, i32
  }
  func.func @transform_4(%arg0: i32) -> (i32, i32) {
    %c0_i32 = arith.constant 0 : i32
    %c0_i32_0 = arith.constant 0 : i32
    %c0_i32_1 = arith.constant 0 : i32
    return %c0_i32, %c0_i32_0 : i32, i32
  }
  func.func @transform_5(%arg0: i32) -> (i32, i32) {
    %c0_i32 = arith.constant 0 : i32
    %c0_i32_0 = arith.constant 0 : i32
    %c0_i32_1 = arith.constant 0 : i32
    return %c0_i32, %c0_i32_0 : i32, i32
  }
  func.func @transform_6(%arg0: i32) -> (i32, i32) {
    %c0_i32 = arith.constant 0 : i32
    %c0_i32_0 = arith.constant 0 : i32
    %c0_i32_1 = arith.constant 0 : i32
    return %c0_i32, %c0_i32_0 : i32, i32
  }
  func.func @transform_7(%arg0: i32) -> (i32, i32) {
    %c0_i32 = arith.constant 0 : i32
    %c0_i32_0 = arith.constant 0 : i32
    return %arg0, %c0_i32 : i32, i32
  }
}

</mosaic_0001>

<bundles_post_ra>
// kernel: tpu_custom_call.1
= control target key start
LH: loop header
LB: loop body
LE: loop exit
PB: predicated region body
PF: predicated region fallthrough
CT: control target
= control target key end

     0   :  { %6 = vsyncpa [#allocation3], 0  ;;  %s124_s0 = inlined_call_operand.hbm [shape: f32[8,128], index: 0, kind: input, shape index: {}]   ;;  %s125_s1 = inlined_call_operand.hbm [shape: f32[8,128], index: 1, kind: output, shape index: {}]  }
   0x1   :  { %7 = vsyncpa [#allocation4], 0  ;;  %s88_s6 = smov [#allocation2]   ;;  %s40_s10 = scalar_lea.hbm %s124_s0, 128 }
   0x2   :  { %s14_s7 = sshll.u32 %s88_s6, 4  ;;  %p41_p0 = scmp.ne.s32.totalorder %s124_s0, %s40_s10  ;;  %s15_s7 = int_to_ptr.vmem [resolvable:$true] %s14_s7 }
   0x3   :  { %p44_p1 = scmp.lt.u32.totalorder %s40_s10, %s124_s0 }
   0x5   :  { %p46_p2 = pnand %p44_p1, %p41_p0 }
   0x7   :  { %49 = shalt.err (!%p46_p2)
}
   0x8   :  { %s50_s15 = scalar_lea.vmem %s15_s7, 128  ;;  %p55_p4 = scmp.lt.s32.totalorder %s15_s7, %s15_s7 }
   0x9   :  { %p51_p3 = scmp.ne.s32.totalorder %s15_s7, %s50_s15  ;;  %p56_p5 = scmp.lt.s32.totalorder %s50_s15, %s50_s15 }
   0xb   :  { %p57_p6 = por %p56_p5, %p55_p4 }
   0xd   :  { %p58_p7 = pnand %p57_p6, %p51_p3 }
   0xf   :  { %61 = shalt.err (!%p58_p7)
}
  0x10   :  { %17 = dma.hbm_to_vmem [thread:$0]  %s124_s0, 128, %s15_s7, [#allocation3]  }
  0x11   :  { %84 = dma.done.wait [#allocation3], 128  }
  0x12   :  { %85 = vsyncadd [#allocation3], 4294967168  ;;  %s89_s18 = smov [#allocation5]   ;;  %v21_v0 = vld [vmem:[#allocation2] sm:$0xff] }
  0x13   :  { %s29_s19 = sshll.u32 %s89_s18, 4  ;;  %22 = vst [vmem:[#allocation5] sm:$0xff] %v21_v0  ;;  %s30_s19 = int_to_ptr.vmem [resolvable:$true] %s29_s19 }
  0x14   :  { %s62_s20 = scalar_lea.vmem %s30_s19, 128  ;;  %p67_p9 = scmp.lt.s32.totalorder %s30_s19, %s30_s19 }
  0x15   :  { %p63_p8 = scmp.ne.s32.totalorder %s30_s19, %s62_s20  ;;  %p68_p10 = scmp.lt.s32.totalorder %s62_s20, %s62_s20 }
  0x17   :  { %p69_p11 = por %p68_p10, %p67_p9 }
  0x19   :  { %p70_p12 = pnand %p69_p11, %p63_p8 }
  0x1b   :  { %73 = shalt.err (!%p70_p12)
}
  0x1c   :  { %s74_s23 = scalar_lea.hbm %s125_s1, 128 }
  0x1d   :  { %p75_p13 = scmp.ne.s32.totalorder %s125_s1, %s74_s23  ;;  %p78_p0 = scmp.lt.u32.totalorder %s74_s23, %s125_s1 }
  0x1f   :  { %p80_p1 = pnand %p78_p0, %p75_p13 }
  0x21   :  { %83 = shalt.err (!%p80_p1)
}
  0x22   :  { %32 = dma.vmem_to_hbm [thread:$0]  %s30_s19, 128, %s125_s1, [#allocation4]  }
  0x23   :  { %86 = dma.done.wait [#allocation4], 128  }
  0x24   :  { %87 = vsyncadd [#allocation4], 4294967168 }
  0x25   :  { %36 = vsyncpa [#allocation3], 1 }
  0x26   :  { %37 = vsyncpa [#allocation4], 1 }

// kernel: _mlp_forward.1
= control target key start
LH: loop header
LB: loop body
LE: loop exit
PB: predicated region body
PF: predicated region fallthrough
CT: control target
= control target key end

     0   :  { %12 = vsyncpa [#allocation3], 0  ;;  %s1138_s0 = inlined_call_operand.hbm [shape: f32[64,128], index: 0, kind: input, shape index: {}]   ;;  %s1139_s1 = inlined_call_operand.hbm [shape: f32[128,128], index: 1, kind: input, shape index: {}]   ;;  %s1140_s2 = inlined_call_operand.vmem [shape: f32[1,128], index: 2, kind: input, shape index: {}]   ;;  %s1141_s3 = inlined_call_operand.hbm [shape: f32[128,128], index: 3, kind: input, shape index: {}]   ;;  %s1142_s4 = inlined_call_operand.vmem [shape: f32[1,128], index: 4, kind: input, shape index: {}]   ;;  %s1143_s5 = inlined_call_operand.hbm [shape: f32[128,128], index: 5, kind: input, shape index: {}]   ;;  %s1144_s6 = inlined_call_operand.vmem [shape: f32[1,128], index: 6, kind: input, shape index: {}]   ;;  %s1145_s7 = inlined_call_operand.hbm [shape: f32[64,128], index: 7, kind: output, shape index: {}]  }
   0x1   :  { %13 = vsyncpa [#allocation6], 0 }
   0x2   :  { %14 = vsyncpa [#allocation9], 0 }
   0x3   :  { %15 = vsyncpa [#allocation4], 0  ;;  %s993_s24 = smov [#allocation5]   ;;  %s994_s26 = smov [#allocation2]  }
   0x4   :  { %s33_s25 = sshll.u32 %s993_s24, 4  ;;  %s21_s27 = sshll.u32 %s994_s26, 4  ;;  %s34_s25 = int_to_ptr.vmem [resolvable:$true] %s33_s25  ;;  %s1040_s27 = int_to_ptr.vmem [resolvable:$true] %s21_s27 }
   0x5   :  { %s875_s30 = scalar_lea.hbm %s1139_s1, 2048 }
   0x6   :  { %p876_p0 = scmp.ne.s32.totalorder %s1139_s1, %s875_s30  ;;  %p879_p1 = scmp.lt.u32.totalorder %s875_s30, %s1139_s1 }
   0x8   :  { %p881_p2 = pnand %p879_p1, %p876_p0 }
   0xa   :  { %884 = shalt.err (!%p881_p2)
}
   0xb   :  { %s885_s12 = scalar_lea.vmem %s34_s25, 2048  ;;  %p890_p4 = scmp.lt.s32.totalorder %s34_s25, %s34_s25 }
   0xc   :  { %p886_p3 = scmp.ne.s32.totalorder %s34_s25, %s885_s12  ;;  %p891_p5 = scmp.lt.s32.totalorder %s885_s12, %s885_s12 }
   0xe   :  { %p892_p6 = por %p891_p5, %p890_p4 }
  0x10   :  { %p893_p7 = pnand %p892_p6, %p886_p3 }
  0x12   :  { %896 = shalt.err (!%p893_p7)
}
  0x13   :  { %s995_s13 = smov 128   ;;  %s996_s14 = smov 8  }
  0x14   :  { %39 = dma.hbm_to_vmem [thread:$0]  %s1139_s1, 2048, %s34_s25, [#allocation6], %s995_s13, %s995_s13, %s996_s14  }
  0x15   :  { %s897_s19 = scalar_lea.hbm %s1138_s0, 1024 }
  0x16   :  { %p898_p8 = scmp.ne.s32.totalorder %s1138_s0, %s897_s19  ;;  %p901_p9 = scmp.lt.u32.totalorder %s897_s19, %s1138_s0 }
  0x18   :  { %p903_p10 = pnand %p901_p9, %p898_p8 }
  0x1a   :  { %906 = shalt.err (!%p903_p10)
}
  0x1b   :  { %s907_s24 = scalar_lea.vmem %s1040_s27, 1024  ;;  %p912_p12 = scmp.lt.s32.totalorder %s1040_s27, %s1040_s27 }
  0x1c   :  { %p908_p11 = scmp.ne.s32.totalorder %s1040_s27, %s907_s24  ;;  %p913_p13 = scmp.lt.s32.totalorder %s907_s24, %s907_s24 }
  0x1e   :  { %p914_p0 = por %p913_p13, %p912_p12 }
  0x20   :  { %p915_p1 = pnand %p914_p0, %p908_p11 }
  0x22   :  { %918 = shalt.err (!%p915_p1)
}
  0x23   :  { %27 = dma.hbm_to_vmem [thread:$0]  %s1138_s0, 1024, %s1040_s27, [#allocation3], %s995_s13, %s995_s13, %s996_s14  }
  0x24   :  { %s997_s26 = smov [#allocation7]   ;;  %s998_s29 = smov [#allocation8]  }
  0x25   :  { %s47_s28 = sshll.u32 %s997_s26, 4  ;;  %s61_s30 = sshll.u32 %s998_s29, 4  ;;  %s48_s28 = int_to_ptr.vmem [resolvable:$true] %s47_s28  ;;  %s1077_s30 = int_to_ptr.vmem [resolvable:$true] %s61_s30 }
  0x26   :  { %s919_s10 = scalar_lea.hbm %s1141_s3, 2048 }
  0x27   :  { %p920_p2 = scmp.ne.s32.totalorder %s1141_s3, %s919_s10  ;;  %p923_p3 = scmp.lt.u32.totalorder %s919_s10, %s1141_s3 }
  0x29   :  { %p925_p4 = pnand %p923_p3, %p920_p2 }
  0x2b   :  { %928 = shalt.err (!%p925_p4)
}
  0x2c   :  { %s929_s0 = scalar_lea.vmem %s48_s28, 2048  ;;  %p934_p6 = scmp.lt.s32.totalorder %s48_s28, %s48_s28 }
  0x2d   :  { %p930_p5 = scmp.ne.s32.totalorder %s48_s28, %s929_s0  ;;  %p935_p7 = scmp.lt.s32.totalorder %s929_s0, %s929_s0 }
  0x2f   :  { %p936_p8 = por %p935_p7, %p934_p6 }
  0x31   :  { %p937_p9 = pnand %p936_p8, %p930_p5 }
  0x33   :  { %940 = shalt.err (!%p937_p9)
}
  0x34   :  { %53 = dma.hbm_to_vmem [thread:$0]  %s1141_s3, 2048, %s48_s28, [#allocation6], %s995_s13, %s995_s13, %s996_s14  }
  0x35   :  { %s941_s20 = scalar_lea.hbm %s1143_s5, 2048 }
  0x36   :  { %p942_p10 = scmp.ne.s32.totalorder %s1143_s5, %s941_s20  ;;  %p945_p11 = scmp.lt.u32.totalorder %s941_s20, %s1143_s5 }
  0x38   :  { %p947_p12 = pnand %p945_p11, %p942_p10 }
  0x3a   :  { %950 = shalt.err (!%p947_p12)
}
  0x3b   :  { %s951_s1 = scalar_lea.vmem %s1077_s30, 2048  ;;  %p956_p0 = scmp.lt.s32.totalorder %s1077_s30, %s1077_s30 }
  0x3c   :  { %p952_p13 = scmp.ne.s32.totalorder %s1077_s30, %s951_s1  ;;  %p957_p1 = scmp.lt.s32.totalorder %s951_s1, %s951_s1 }
  0x3e   :  { %p958_p2 = por %p957_p1, %p956_p0 }
  0x40   :  { %p959_p3 = pnand %p958_p2, %p952_p13 }
  0x42   :  { %962 = shalt.err (!%p959_p3)
}
  0x43   :  { %67 = dma.hbm_to_vmem [thread:$0]  %s1143_s5, 2048, %s1077_s30, [#allocation9], %s995_s13, %s995_s13, %s996_s14  }
  0x44   :  { %985 = dma.done.wait [#allocation3], 1024  }
  0x45   :  { %986 = vsyncadd [#allocation3], 4294966272 }
  0x46   :  { %987 = dma.done.wait [#allocation6], 4096  }
  0x47   :  { %988 = vsyncadd [#allocation6], 4294963200 }
  0x48   :  { %989 = dma.done.wait [#allocation9], 2048  }
  0x49   :  { %990 = vsyncadd [#allocation9], 4294965248  ;;  %v90_v0 = vld [vmem:[#allocation5] sm:$0xff]  ;;  %v91_v1 = vld [vmem:[#allocation5 + $0x8] sm:$0xff]  ;;  %s999_s30 = smov [#allocation10]  }
  0x4a   :  { %v92_v2 = vld [vmem:[#allocation5 + $0x10] sm:$0xff]  ;;  %v724_v3 = vpack.c.bf16 %v91_v1, %v90_v0  ;;  %v93_v4 = vld [vmem:[#allocation5 + $0x18] sm:$0xff]  ;;  %v94_v6 = vld [vmem:[#allocation5 + $0x20] sm:$0xff]  ;;  %s503_s8 = sshll.u32 %s999_s30, 4  ;;  %s504_s8 = int_to_ptr.vmem [resolvable:$true] %s503_s8 }
  0x4b   :  { %v728_v5 = vpack.c.bf16 %v93_v4, %v92_v2  ;;  %v95_v7 = vld [vmem:[#allocation5 + $0x28] sm:$0xff]  ;;  %v82_v9 = vld [vmem:[#allocation2] sm:$0xff]  ;;  %v96_v10 = vld [vmem:[#allocation5 + $0x30] sm:$0xff]  ;;  %p968_p5 = scmp.lt.s32.totalorder %s504_s8, %s504_s8 }
  0x4c   :  { %725 = vmatprep.subr.bf16.mxu0 %v724_v3  ;;  %v732_v8 = vpack.c.bf16 %v95_v7, %v94_v6  ;;  %v97_v11 = vld [vmem:[#allocation5 + $0x38] sm:$0xff]  ;;  %624 = vmatprep.mubr.f32.mxu0 %v82_v9  ;;  %v226_v12 = vld [vmem:[#allocation7] sm:$0xff]  ;;  %v227_v13 = vld [vmem:[#allocation7 + $0x8] sm:$0xff] }
  0x4d   :  { %727 = vmatpush3.bf16.msra.mxu0 %v724_v3  ;;  %v228_v14 = vld [vmem:[#allocation7 + $0x10] sm:$0xff]  ;;  %v736_v15 = vpack.c.bf16 %v97_v11, %v96_v10  ;;  %v98_v16 = vld [vmem:[#allocation5 + $0x40] sm:$0xff]  ;;  %v756_v17 = vpack.c.bf16 %v227_v13, %v226_v12  ;;  %v229_v18 = vld [vmem:[#allocation7 + $0x18] sm:$0xff] }
  0x4e   :  { %729 = vmatprep.subr.bf16.mxu0 %v728_v5  ;;  %v99_v19 = vld [vmem:[#allocation5 + $0x48] sm:$0xff]  ;;  %v760_v20 = vpack.c.bf16 %v229_v18, %v228_v14  ;;  %v230_v21 = vld [vmem:[#allocation7 + $0x20] sm:$0xff]  ;;  %v100_v24 = vld [vmem:[#allocation5 + $0x50] sm:$0xff] }
  0x4f   :  { %v231_v22 = vld [vmem:[#allocation7 + $0x28] sm:$0xff]  ;;  %757 = vmatprep.subr.bf16.mxu1 %v756_v17  ;;  %v740_v23 = vpack.c.bf16 %v99_v19, %v98_v16  ;;  %v101_v26 = vld [vmem:[#allocation5 + $0x58] sm:$0xff]  ;;  %v232_v27 = vld [vmem:[#allocation7 + $0x30] sm:$0xff] }
  0x50   :  { %759 = vmatpush3.bf16.msra.mxu1 %v756_v17  ;;  %v764_v25 = vpack.c.bf16 %v231_v22, %v230_v21  ;;  %v233_v28 = vld [vmem:[#allocation7 + $0x38] sm:$0xff]  ;;  %v744_v29 = vpack.c.bf16 %v101_v26, %v100_v24  ;;  %v102_v31 = vld [vmem:[#allocation5 + $0x60] sm:$0xff]  ;;  %v103_v32 = vld [vmem:[#allocation5 + $0x68] sm:$0xff] }
  0x51   :  { %731 = vmatpush3.bf16.msra.mxu0 %v728_v5  ;;  %761 = vmatprep.subr.bf16.mxu1 %v760_v20  ;;  %v768_v30 = vpack.c.bf16 %v233_v28, %v232_v27  ;;  %v748_v33 = vpack.c.bf16 %v103_v32, %v102_v31  ;;  %v104_v34 = vld [vmem:[#allocation5 + $0x70] sm:$0xff]  ;;  %v105_v35 = vld [vmem:[#allocation5 + $0x78] sm:$0xff]  ;;  %v83_v37 = vld [vmem:[#allocation2 + $0x8] sm:$0xff] }
  0x52   :  { %733 = vmatprep.subr.bf16.mxu0 %v732_v8  ;;  %v752_v36 = vpack.c.bf16 %v105_v35, %v104_v34  ;;  %v84_v38 = vld [vmem:[#allocation2 + $0x10] sm:$0xff]  ;;  %v85_v39 = vld [vmem:[#allocation2 + $0x18] sm:$0xff]  ;;  %v86_v40 = vld [vmem:[#allocation2 + $0x20] sm:$0xff] }
  0x53   :  { %v87_v41 = vld [vmem:[#allocation2 + $0x28] sm:$0xff]  ;;  %v88_v42 = vld [vmem:[#allocation2 + $0x30] sm:$0xff]  ;;  %v89_v43 = vld [vmem:[#allocation2 + $0x38] sm:$0xff] }
  0x54   :  { %763 = vmatpush3.bf16.msra.mxu1 %v760_v20  ;;  %v234_v44 = vld [vmem:[#allocation7 + $0x40] sm:$0xff]  ;;  %v235_v45 = vld [vmem:[#allocation7 + $0x48] sm:$0xff]  ;;  %v236_v47 = vld [vmem:[#allocation7 + $0x50] sm:$0xff] }
  0x55   :  { %735 = vmatpush3.bf16.msra.mxu0 %v732_v8  ;;  %765 = vmatprep.subr.bf16.mxu1 %v764_v25  ;;  %v772_v46 = vpack.c.bf16 %v235_v45, %v234_v44  ;;  %v237_v48 = vld [vmem:[#allocation7 + $0x58] sm:$0xff]  ;;  %v238_v50 = vld [vmem:[#allocation7 + $0x60] sm:$0xff]  ;;  %v239_v51 = vld [vmem:[#allocation7 + $0x68] sm:$0xff] }
  0x56   :  { %737 = vmatprep.subr.bf16.mxu0 %v736_v15  ;;  %v776_v49 = vpack.c.bf16 %v237_v48, %v236_v47  ;;  %v780_v52 = vpack.c.bf16 %v239_v51, %v238_v50  ;;  %v240_v53 = vld [vmem:[#allocation7 + $0x70] sm:$0xff]  ;;  %v241_v54 = vld [vmem:[#allocation7 + $0x78] sm:$0xff]  ;;  %v362_v56 = vld [vmem:[#allocation8] sm:$0xff] }
  0x57   :  { %v784_v55 = vpack.c.bf16 %v241_v54, %v240_v53  ;;  %v363_v57 = vld [vmem:[#allocation8 + $0x8] sm:$0xff]  ;;  %v364_v58 = vld [vmem:[#allocation8 + $0x10] sm:$0xff]  ;;  %v365_v60 = vld [vmem:[#allocation8 + $0x18] sm:$0xff] }
  0x58   :  { %767 = vmatpush3.bf16.msra.mxu1 %v764_v25  ;;  %v788_v59 = vpack.c.bf16 %v363_v57, %v362_v56  ;;  %v792_v61 = vpack.c.bf16 %v365_v60, %v364_v58  ;;  %v366_v62 = vld [vmem:[#allocation8 + $0x20] sm:$0xff]  ;;  %v367_v63 = vld [vmem:[#allocation8 + $0x28] sm:$0xff]  ;;  %v368_v1 = vld [vmem:[#allocation8 + $0x30] sm:$0xff] }
  0x59   :  { %739 = vmatpush3.bf16.msra.mxu0 %v736_v15  ;;  %769 = vmatprep.subr.bf16.mxu1 %v768_v30  ;;  %v796_v0 = vpack.c.bf16 %v367_v63, %v366_v62  ;;  %v369_v2 = vld [vmem:[#allocation8 + $0x38] sm:$0xff]  ;;  %v517_v4 = vld [vmem:[%s1140_s2] ss:$0 sm:$0xff]  ;;  %v372_v32 = vld [vmem:[#allocation8 + $0x50] sm:$0xff] }
  0x5a   :  { %741 = vmatprep.subr.bf16.mxu0 %v740_v23  ;;  %v800_v3 = vpack.c.bf16 %v369_v2, %v368_v1  ;;  %v374_v35 = vld [vmem:[#allocation8 + $0x60] sm:$0xff] }
  0x5b   :  { %v519_v2 = vld [vmem:[%s1144_s6] ss:$0 sm:$0xff]  ;;  %s963_s6 = scalar_lea.vmem %s504_s8, 1024 }
  0x5c   :  { %771 = vmatpush3.bf16.msra.mxu1 %v768_v30  ;;  %v371_v30 = vld [vmem:[#allocation8 + $0x48] sm:$0xff]  ;;  %p964_p4 = scmp.ne.s32.totalorder %s504_s8, %s963_s6  ;;  %p969_p6 = scmp.lt.s32.totalorder %s963_s6, %s963_s6 }
  0x5d   :  { %743 = vmatpush3.bf16.msra.mxu0 %v740_v23  ;;  %773 = vmatprep.subr.bf16.mxu1 %v772_v46 }
  0x5e   :  { %745 = vmatprep.subr.bf16.mxu0 %v744_v29  ;;  %p970_p7 = por %p969_p6, %p968_p5 }
  0x60   :  { %775 = vmatpush3.bf16.msra.mxu1 %v772_v46  ;;  %p971_p8 = pnand %p970_p7, %p964_p4 }
  0x61   :  { %747 = vmatpush3.bf16.msra.mxu0 %v744_v29  ;;  %777 = vmatprep.subr.bf16.mxu1 %v776_v49  ;;  %v370_v29 = vld [vmem:[#allocation8 + $0x40] sm:$0xff] }
  0x62   :  { %749 = vmatprep.subr.bf16.mxu0 %v748_v33  ;;  %v804_v31 = vpack.c.bf16 %v371_v30, %v370_v29 }
  0x64   :  { %779 = vmatpush3.bf16.msra.mxu1 %v776_v49 }
  0x65   :  { %751 = vmatpush3.bf16.msra.mxu0 %v748_v33  ;;  %781 = vmatprep.subr.bf16.mxu1 %v780_v52  ;;  %v373_v33 = vld [vmem:[#allocation8 + $0x58] sm:$0xff] }
  0x66   :  { %753 = vmatprep.subr.bf16.mxu0 %v752_v36  ;;  %v808_v34 = vpack.c.bf16 %v373_v33, %v372_v32 }
  0x68   :  { %783 = vmatpush3.bf16.msra.mxu1 %v780_v52 }
  0x69   :  { %755 = vmatpush3.bf16.msra.mxu0 %v752_v36  ;;  %785 = vmatprep.subr.bf16.mxu1 %v784_v55  ;;  %v375_v36 = vld [vmem:[#allocation8 + $0x68] sm:$0xff] }
  0x6a   :  { %789 = vmatprep.subr.bf16.mxu0 %v788_v59 }
  0x6c   :  { %625 = vmatmul.mubr.f32.vlgmr.msra.gmra.mrb[0].mxu0 %v83_v37  ;;  %787 = vmatpush3.bf16.msra.mxu1 %v784_v55  ;;  %v812_v37 = vpack.c.bf16 %v375_v36, %v374_v35 }
  0x6d   :  { %627 = vmatprep.mubr.f32.mxu0 %v84_v38  ;;  %820 = vmatprep.subr.bf16.mxu1 %v788_v59  ;;  %v376_v38 = vld [vmem:[#allocation8 + $0x70] sm:$0xff] }
  0x6e   :  { %791 = vmatpush3.bf16.msra.mxu0 %v788_v59 }
  0x6f   :  { %793 = vmatprep.subr.bf16.mxu0 %v792_v61 }
  0x70   :  { %628 = vmatmul.mubr.f32.gmra.mrb[2].mxu0 %v85_v39  ;;  %v377_v39 = vld [vmem:[#allocation8 + $0x78] sm:$0xff] }
  0x71   :  { %630 = vmatprep.mubr.f32.mxu0 %v86_v40  ;;  %v816_v40 = vpack.c.bf16 %v377_v39, %v376_v38 }
  0x72   :  { %795 = vmatpush3.bf16.msra.mxu0 %v792_v61 }
  0x73   :  { %797 = vmatprep.subr.bf16.mxu0 %v796_v0 }
  0x74   :  { %631 = vmatmul.mubr.f32.gmra.mrb[4].mxu0 %v87_v41  ;;  %v518_v41 = vld [vmem:[%s1142_s4] ss:$0 sm:$0xff] }
  0x75   :  { %633 = vmatprep.mubr.f32.mxu0 %v88_v42 }
  0x76   :  { %799 = vmatpush3.bf16.msra.mxu0 %v796_v0 }
  0x77   :  { %801 = vmatprep.subr.bf16.mxu0 %v800_v3 }
  0x78   :  { %634 = vmatmul.mubr.f32.gmra.mrb[6].mxu0 %v89_v43 }
  0x7a   :  { %803 = vmatpush3.bf16.msra.mxu0 %v800_v3 }
  0x7b   :  { %805 = vmatprep.subr.bf16.mxu0 %v804_v31 }
  0x7e   :  { %807 = vmatpush3.bf16.msra.mxu0 %v804_v31 }
  0x7f   :  { %809 = vmatprep.subr.bf16.mxu0 %v808_v34 }
  0x82   :  { %811 = vmatpush3.bf16.msra.mxu0 %v808_v34 }
  0x83   :  { %813 = vmatprep.subr.bf16.mxu0 %v812_v37 }
  0x86   :  { %815 = vmatpush3.bf16.msra.mxu0 %v812_v37 }
  0x87   :  { %817 = vmatprep.subr.bf16.mxu0 %v816_v40 }
  0x8a   :  { %819 = vmatpush3.bf16.msra.mxu0 %v816_v40 }
 0x13f   :  { %v626_v5 = vpop.f32.mrb[0].mxu0 }
 0x140   :  { %v185_v6 = vadd.f32 %v626_v5, %v517_v4  ;;  %v179_v7 = vpop.f32.mrb[1].mxu0 }
 0x141   :  { %v180_v8 = vadd.f32 %v517_v4, %v179_v7 }
 0x143   :  { %843 = vtanh.f32 %v180_v8  ;;  %v629_v9 = vpop.f32.mrb[2].mxu0 }
 0x144   :  { %845 = vtanh.f32 %v185_v6  ;;  %v195_v10 = vadd.f32 %v629_v9, %v517_v4  ;;  %v189_v11 = vpop.f32.mrb[3].mxu0 }
 0x145   :  { %v190_v12 = vadd.f32 %v517_v4, %v189_v11 }
 0x147   :  { %847 = vtanh.f32 %v190_v12  ;;  %v632_v13 = vpop.f32.mrb[4].mxu0 }
 0x148   :  { %849 = vtanh.f32 %v195_v10  ;;  %v205_v14 = vadd.f32 %v632_v13, %v517_v4  ;;  %v199_v15 = vpop.f32.mrb[5].mxu0 }
 0x149   :  { %v200_v16 = vadd.f32 %v517_v4, %v199_v15 }
 0x14b   :  { %851 = vtanh.f32 %v200_v16  ;;  %v635_v17 = vpop.f32.mrb[6].mxu0 }
 0x14c   :  { %853 = vtanh.f32 %v205_v14  ;;  %v215_v18 = vadd.f32 %v635_v17, %v517_v4  ;;  %v209_v19 = vpop.f32.mrb[7].mxu0 }
 0x14d   :  { %v844_v20 = vpop.eup %843  ;;  %v210_v21 = vadd.f32 %v517_v4, %v209_v19 }
 0x14e   :  { %v846_v22 = vpop.eup %845  ;;  %668 = vmatprep.mubr.f32.mxu1 %v844_v20 }
 0x14f   :  { %855 = vtanh.f32 %v210_v21  ;;  %669 = vmatmul.mubr.f32.vlgmr.msra.gmra.mrb[0].mxu1 %v846_v22 }
 0x150   :  { %857 = vtanh.f32 %v215_v18  ;;  %828 = vmatpush3.bf16.msra.mxu1 %v788_v59 }
 0x151   :  { %v848_v23 = vpop.eup %847  ;;  %821 = vmatprep.subr.bf16.mxu1 %v792_v61 }
 0x152   :  { %v850_v24 = vpop.eup %849  ;;  %671 = vmatprep.mubr.f32.mxu1 %v848_v23 }
 0x153   :  { %672 = vmatmul.mubr.f32.gmra.mrb[2].mxu1 %v850_v24 }
 0x154   :  { %829 = vmatpush3.bf16.msra.mxu1 %v792_v61 }
 0x155   :  { %v852_v25 = vpop.eup %851  ;;  %822 = vmatprep.subr.bf16.mxu1 %v796_v0 }
 0x156   :  { %v854_v26 = vpop.eup %853  ;;  %674 = vmatprep.mubr.f32.mxu1 %v852_v25 }
 0x157   :  { %675 = vmatmul.mubr.f32.gmra.mrb[4].mxu1 %v854_v26 }
 0x158   :  { %830 = vmatpush3.bf16.msra.mxu1 %v796_v0 }
 0x159   :  { %v856_v27 = vpop.eup %855  ;;  %823 = vmatprep.subr.bf16.mxu1 %v800_v3 }
 0x15a   :  { %v858_v28 = vpop.eup %857  ;;  %677 = vmatprep.mubr.f32.mxu1 %v856_v27 }
 0x15b   :  { %678 = vmatmul.mubr.f32.gmra.mrb[6].mxu1 %v858_v28 }
 0x15c   :  { %831 = vmatpush3.bf16.msra.mxu1 %v800_v3 }
 0x15d   :  { %824 = vmatprep.subr.bf16.mxu1 %v804_v31 }
 0x160   :  { %832 = vmatpush3.bf16.msra.mxu1 %v804_v31 }
 0x161   :  { %825 = vmatprep.subr.bf16.mxu1 %v808_v34 }
 0x164   :  { %833 = vmatpush3.bf16.msra.mxu1 %v808_v34 }
 0x165   :  { %826 = vmatprep.subr.bf16.mxu1 %v812_v37 }
 0x168   :  { %834 = vmatpush3.bf16.msra.mxu1 %v812_v37 }
 0x169   :  { %827 = vmatprep.subr.bf16.mxu1 %v816_v40 }
 0x16c   :  { %835 = vmatpush3.bf16.msra.mxu1 %v816_v40 }
 0x222   :  { %v670_v42 = vpop.f32.mrb[0].mxu1 }
 0x223   :  { %v321_v43 = vadd.f32 %v670_v42, %v518_v41  ;;  %v315_v44 = vpop.f32.mrb[1].mxu1 }
 0x224   :  { %v316_v45 = vadd.f32 %v518_v41, %v315_v44 }
 0x226   :  { %859 = vtanh.f32 %v316_v45  ;;  %v673_v46 = vpop.f32.mrb[2].mxu1 }
 0x227   :  { %861 = vtanh.f32 %v321_v43  ;;  %v331_v47 = vadd.f32 %v673_v46, %v518_v41  ;;  %v325_v48 = vpop.f32.mrb[3].mxu1 }
 0x228   :  { %v326_v49 = vadd.f32 %v518_v41, %v325_v48 }
 0x22a   :  { %863 = vtanh.f32 %v326_v49  ;;  %v676_v50 = vpop.f32.mrb[4].mxu1 }
 0x22b   :  { %865 = vtanh.f32 %v331_v47  ;;  %v341_v51 = vadd.f32 %v676_v50, %v518_v41  ;;  %v335_v52 = vpop.f32.mrb[5].mxu1 }
 0x22c   :  { %v336_v53 = vadd.f32 %v518_v41, %v335_v52 }
 0x22e   :  { %867 = vtanh.f32 %v336_v53  ;;  %v679_v54 = vpop.f32.mrb[6].mxu1 }
 0x22f   :  { %869 = vtanh.f32 %v341_v51  ;;  %v351_v55 = vadd.f32 %v679_v54, %v518_v41  ;;  %v345_v56 = vpop.f32.mrb[7].mxu1 }
 0x230   :  { %v860_v57 = vpop.eup %859  ;;  %v346_v58 = vadd.f32 %v518_v41, %v345_v56 }
 0x231   :  { %v862_v59 = vpop.eup %861  ;;  %712 = vmatprep.mubr.f32.mxu0 %v860_v57 }
 0x232   :  { %871 = vtanh.f32 %v346_v58  ;;  %713 = vmatmul.mubr.f32.vlgmr.msra.gmra.mrb[8].mxu0 %v862_v59 }
 0x233   :  { %873 = vtanh.f32 %v351_v55 }
 0x234   :  { %v864_v60 = vpop.eup %863 }
 0x235   :  { %v866_v61 = vpop.eup %865  ;;  %715 = vmatprep.mubr.f32.mxu0 %v864_v60 }
 0x236   :  { %716 = vmatmul.mubr.f32.gmra.mrb[10].mxu0 %v866_v61 }
 0x238   :  { %v868_v62 = vpop.eup %867 }
 0x239   :  { %v870_v63 = vpop.eup %869  ;;  %718 = vmatprep.mubr.f32.mxu1 %v868_v62 }
 0x23a   :  { %719 = vmatmul.mubr.f32.vlgmr.msra.gmra.mrb[8].mxu1 %v870_v63 }
 0x23c   :  { %v872_v0 = vpop.eup %871 }
 0x23d   :  { %v874_v1 = vpop.eup %873  ;;  %721 = vmatprep.mubr.f32.mxu1 %v872_v0 }
 0x23e   :  { %722 = vmatmul.mubr.f32.gmra.mrb[10].mxu1 %v874_v1 }
 0x305   :  { %v714_v3 = vpop.f32.mrb[8].mxu0 }
 0x306   :  { %v457_v4 = vadd.f32 %v714_v3, %v519_v2  ;;  %v451_v5 = vpop.f32.mrb[9].mxu0 }
 0x307   :  { %v452_v6 = vadd.f32 %v519_v2, %v451_v5 }
 0x308   :  { %491 = vst [vmem:[#allocation10 + $0x8] sm:$0xff] %v457_v4 }
 0x309   :  { %490 = vst [vmem:[#allocation10] sm:$0xff] %v452_v6  ;;  %v717_v7 = vpop.f32.mrb[10].mxu0 }
 0x30a   :  { %v467_v8 = vadd.f32 %v717_v7, %v519_v2  ;;  %v461_v9 = vpop.f32.mrb[11].mxu0 }
 0x30b   :  { %v462_v10 = vadd.f32 %v519_v2, %v461_v9 }
 0x30c   :  { %493 = vst [vmem:[#allocation10 + $0x18] sm:$0xff] %v467_v8 }
 0x30d   :  { %492 = vst [vmem:[#allocation10 + $0x10] sm:$0xff] %v462_v10  ;;  %v720_v11 = vpop.f32.mrb[8].mxu1 }
 0x30e   :  { %v477_v12 = vadd.f32 %v720_v11, %v519_v2  ;;  %v471_v13 = vpop.f32.mrb[9].mxu1 }
 0x30f   :  { %v472_v14 = vadd.f32 %v519_v2, %v471_v13 }
 0x310   :  { %495 = vst [vmem:[#allocation10 + $0x28] sm:$0xff] %v477_v12 }
 0x311   :  { %494 = vst [vmem:[#allocation10 + $0x20] sm:$0xff] %v472_v14  ;;  %v723_v15 = vpop.f32.mrb[10].mxu1 }
 0x312   :  { %v487_v16 = vadd.f32 %v723_v15, %v519_v2  ;;  %v481_v17 = vpop.f32.mrb[11].mxu1 }
 0x313   :  { %v482_v18 = vadd.f32 %v519_v2, %v481_v17 }
 0x314   :  { %497 = vst [vmem:[#allocation10 + $0x38] sm:$0xff] %v487_v16 }
 0x315   :  { %496 = vst [vmem:[#allocation10 + $0x30] sm:$0xff] %v482_v18 }
 0x316   :  { %974 = shalt.err (!%p971_p8)
}
 0x317   :  { %s975_s11 = scalar_lea.hbm %s1145_s7, 1024 }
 0x318   :  { %p976_p9 = scmp.ne.s32.totalorder %s1145_s7, %s975_s11  ;;  %p979_p10 = scmp.lt.u32.totalorder %s975_s11, %s1145_s7 }
 0x31a   :  { %p981_p11 = pnand %p979_p10, %p976_p9 }
 0x31c   :  { %984 = shalt.err (!%p981_p11)
}
 0x31d   :  { %509 = dma.vmem_to_hbm [thread:$0]  %s504_s8, 1024, %s1145_s7, [#allocation4], %s995_s13, %s995_s13, %s996_s14  }
 0x31e   :  { %991 = dma.done.wait [#allocation4], 1024  }
 0x31f   :  { %992 = vsyncadd [#allocation4], 4294966272 }
 0x320   :  { %513 = vsyncpa [#allocation3], 1 }
 0x321   :  { %514 = vsyncpa [#allocation6], 1 }
 0x322   :  { %515 = vsyncpa [#allocation9], 1 }
 0x323   :  { %516 = vsyncpa [#allocation4], 1 }

</bundles_post_ra>
